<compile_context>
chip_gen: v6e
topology: v6e:2x2x1
jax: 0.10.0
libtpu: 0.0.40
codegen_flags: <defaults>
</compile_context>

<pallas_src>
import jax
import jax.numpy as jnp
from jax.experimental import pallas as pl
from jax.experimental.pallas import tpu as pltpu


def _round_up(n, m):
    return ((n + m - 1) // m) * m


def _bspec(shape, index_map, buffers=None):
    """BlockSpec with an optional explicit pipeline buffer count."""
    if buffers is not None:
        try:
            return pl.BlockSpec(shape, index_map,
                                pipeline_mode=pl.Buffered(buffers))
        except Exception:
            pass  # fall back to default double-buffering
    return pl.BlockSpec(shape, index_map)


def _mlp_relu_kernel(x_ref, w1_ref, b1_ref, w2_ref, b2_ref, o_ref):
    # x: (TB, D) streamed; w1: (D, H) resident (compute dtype); b1/w2: (1, H)
    # resident f32; b2: (1, 1) in SMEM.  Output block: (1, TB), batch on lanes.
    h = jnp.dot(x_ref[...].astype(w1_ref.dtype), w1_ref[...],
                preferred_element_type=jnp.float32)
    h = jnp.maximum(h + b1_ref[...], 0.0)
    # fc2 (out_features == 1): VPU elementwise mul + lane (XLU) reduction —
    # rides in slots left idle next to the single MXU pass; no transposes.
    y = jnp.sum(h * w2_ref[...], axis=-1) + b2_ref[0, 0]
    o_ref[...] = jax.nn.sigmoid(y)[None, :].astype(o_ref.dtype)


def _affine_sigmoid_kernel(x_ref, w_ref, b_ref, o_ref):
    # use_relu=False path: fc2(fc1(x)) folded in the wrapper into one affine map.
    y = jnp.sum(x_ref[...].astype(jnp.float32) * w_ref[...], axis=-1) + b_ref[0, 0]
    o_ref[...] = jax.nn.sigmoid(y)[None, :].astype(o_ref.dtype)


def mlp_forward(x, w1, b1, w2, b2, *, use_relu=True, compute_dtype=jnp.bfloat16):
    """Pallas forward for the MLP.

    x:  [B, D];  w1: [D, H] (pre-transposed vs. torch's [H, D]);  b1: [H]/[1, H];
    w2: [H, 1] or [H] (pre-transposed vs. torch's [1, H]);  b2: scalar/[1]/[1, 1].
    Returns sigmoid(fc2(relu?(fc1(x)))) with shape [B, 1].
    """
    x = jnp.asarray(x)
    B, D = x.shape
    w1 = jnp.asarray(w1, jnp.float32)
    H = w1.shape[1]
    b1 = jnp.asarray(b1, jnp.float32).reshape(1, H)
    w2_row = jnp.asarray(w2, jnp.float32).reshape(1, H)
    b2 = jnp.asarray(b2, jnp.float32).reshape(1, 1)

    x_item = jnp.dtype(x.dtype).itemsize
    out_item = x_item
    x_bufs = 3  # pipeline depth for the streamed x tiles

    # ---- Batch tile: target ~MiB-scale x DMAs inside a VMEM budget derived
    # from the actual chip (v7x: 64 MiB physical, v5e/v6e: 128 MiB).
    try:
        vmem_phys = int(pltpu.get_tpu_info().vmem_capacity_bytes)
    except Exception:
        vmem_phys = 64 << 20  # conservative (v7x per-core) default
    stream_budget = min(vmem_phys // 4, 24 << 20)
    tb_cap = stream_budget // (x_bufs * D * x_item)
    tb_cap = max(128, min(8192, (tb_cap // 128) * 128))

    x_in = x
    if B <= 128:
        # Single tile: round tile (and output width) to 128 lanes so the store
        # is an unmasked vst; padding <=127 rows of x here is negligible.
        TB = 128
        n_tiles = 1
        if B < TB:
            x_in = jnp.pad(x, ((0, TB - B), (0, 0)))
    else:
        # No x padding: the last block reads OOB rows (safe: row-wise op, tail
        # output lanes sliced off).  Aim for >=2 grid steps for v7x megacore.
        TB = max(128, min(tb_cap, _round_up(pl.cdiv(B, 2), 128)))
        n_tiles = pl.cdiv(B, TB)
    Bp = n_tiles * TB  # padded OUTPUT width only

    if use_relu:
        w1c = w1.astype(compute_dtype)
        weight_bytes = D * H * jnp.dtype(compute_dtype).itemsize + 2 * H * 4
        flops = 2 * B * D * H + 3 * B * H
    else:
        # Without the nonlinearity the composition is affine: fold the layers
        # (high-precision fold so the result matches the two-layer math).
        hi = jax.lax.Precision.HIGHEST
        w_fold = jnp.dot(w1, w2_row.T, precision=hi).reshape(1, D)       # (1, D)
        b_fold = (jnp.dot(b1, w2_row.T, precision=hi) + b2).reshape(1, 1)
        weight_bytes = D * 4
        flops = 3 * B * D

    stream_bytes = x_bufs * TB * D * x_item + 2 * TB * out_item
    vmem_limit = int(min(vmem_phys,
                         max(stream_bytes + weight_bytes + (8 << 20), 32 << 20)))
    cost = pl.CostEstimate(
        flops=int(flops),
        transcendentals=int(B),
        bytes_accessed=int(B * D * x_item + B * out_item + weight_bytes))

    # TODO(synk): for very large D*H (w1 no longer VMEM-resident, esp. on v7x),
    # add a trailing "arbitrary" grid axis over H with a VMEM partial-sum
    # accumulator finalized via pl.when on the last H-step.

    def _run(with_buffering):
        buf = (lambda n: n) if with_buffering else (lambda n: None)
        x_spec = _bspec((TB, D), lambda i: (i, 0), buffers=buf(x_bufs))
        resident = lambda shape: _bspec(shape, lambda i: (0, 0), buffers=buf(1))
        out_spec = pl.BlockSpec((1, TB), lambda i: (0, i))
        smem_spec = pl.BlockSpec(memory_space=pltpu.MemorySpace.SMEM)
        if use_relu:
            kernel = _mlp_relu_kernel
            in_specs = [x_spec, resident((D, H)), resident((1, H)),
                        resident((1, H)), smem_spec]
            args = (x_in, w1c, b1, w2_row, b2)
        else:
            kernel = _affine_sigmoid_kernel
            in_specs = [x_spec, resident((1, D)), smem_spec]
            args = (x_in, w_fold, b_fold)
        return pl.pallas_call(
            kernel,
            out_shape=jax.ShapeDtypeStruct((1, Bp), x_in.dtype),
            grid=(n_tiles,),
            in_specs=in_specs,
            out_specs=out_spec,
            compiler_params=pltpu.CompilerParams(
                dimension_semantics=("parallel",),
                vmem_limit_bytes=vmem_limit),
            cost_estimate=cost,
        )(*args)

    try:
        out = _run(True)
    except Exception:
        # Fallback for builds where pipeline_mode=pl.Buffered(n) can't lower:
        # identical kernel with default buffering.
        out = _run(False)
    return out[0, :B].reshape(B, 1)


def _reference(x, w1, b1, w2, b2, use_relu, compute_dtype=jnp.float32):
    """Plain-JAX reference mirroring the kernel's fc1 dtype policy."""
    hi = jax.lax.Precision.HIGHEST
    w1 = jnp.asarray(w1, jnp.float32)
    h = jnp.dot(jnp.asarray(x).astype(compute_dtype), w1.astype(compute_dtype),
                preferred_element_type=jnp.float32, precision=hi)
    h = h + jnp.asarray(b1, jnp.float32).reshape(1, -1)
    if use_relu:
        h = jnp.maximum(h, 0.0)
    y = jnp.dot(h, jnp.asarray(w2, jnp.float32).reshape(-1, 1), precision=hi)
    y = y + jnp.asarray(b2, jnp.float32).reshape(1, 1)
    return jax.nn.sigmoid(y)


if __name__ == "__main__":
    # Small shapes consistent with the module: batch=8, n_input=32, n_hidden=32.
    B, n_input, n_hidden = 8, 32, 32

    key = jax.random.PRNGKey(0)
    kx, kw1, kb1, kw2, kb2, kx2 = jax.random.split(key, 6)

    x = jax.random.normal(kx, (B, n_input), dtype=jnp.float32)

    # Deterministic parameter init (uniform, roughly like PyTorch Linear init).
    bound1 = 1.0 / (n_input ** 0.5)
    w1 = jax.random.uniform(kw1, (n_input, n_hidden), jnp.float32, -bound1, bound1)
    b1 = jax.random.uniform(kb1, (n_hidden,), jnp.float32, -bound1, bound1)
    bound2 = 1.0 / (n_hidden ** 0.5)
    w2 = jax.random.uniform(kw2, (n_hidden, 1), jnp.float32, -bound2, bound2)
    b2 = jax.random.uniform(kb2, (1,), jnp.float32, -bound2, bound2)

    TOL = 2e-3  # covers bf16-matmul / precision-mode differences; real bugs are O(0.1)
    ok = True

    # 1) Default path: use_relu=True, bf16 fc1 matmul, single (128-lane) tile.
    out = jax.block_until_ready(mlp_forward(x, w1, b1, w2, b2, use_relu=True))
    ref = _reference(x, w1, b1, w2, b2, True, jnp.bfloat16)
    ok &= out.shape == (B, 1)
    ok &= bool(jnp.allclose(out, ref, atol=TOL, rtol=TOL))

    # 2) Full-f32 compute path.
    out_f32 = jax.block_until_ready(
        mlp_forward(x, w1, b1, w2, b2, use_relu=True, compute_dtype=jnp.float32))
    ref_f32 = _reference(x, w1, b1, w2, b2, True, jnp.float32)
    ok &= bool(jnp.allclose(out_f32, ref_f32, atol=TOL, rtol=TOL))

    # 3) use_relu=False (folded affine + sigmoid kernel).
    out_nr = jax.block_until_ready(mlp_forward(x, w1, b1, w2, b2, use_relu=False))
    ref_nr = _reference(x, w1, b1, w2, b2, False, jnp.float32)
    ok &= bool(jnp.allclose(out_nr, ref_nr, atol=TOL, rtol=TOL))

    # 4) Multi-tile path with a non-multiple batch: exercises >=2 grid steps
    #    (megacore) and the un-padded OOB tail block.
    B2 = 300
    x2 = jax.random.normal(kx2, (B2, n_input), dtype=jnp.float32)
    out2 = jax.block_until_ready(mlp_forward(x2, w1, b1, w2, b2, use_relu=True))
    ref2 = _reference(x2, w1, b1, w2, b2, True, jnp.bfloat16)
    ok &= out2.shape == (B2, 1)
    ok &= bool(jnp.allclose(out2, ref2, atol=TOL, rtol=TOL))

    assert ok
    print("KERNEL_OK")
</pallas_src>

<mosaic_0001>
module attributes {stable_mosaic.version = 11 : i64} {
  func.func @_mlp_relu_kernel(%arg0: i32, %arg1: memref<128x32xf32, #tpu.memory_space<vmem>>, %arg2: memref<32x32xbf16, #tpu.memory_space<vmem>>, %arg3: memref<1x32xf32, #tpu.memory_space<vmem>>, %arg4: memref<1x32xf32, #tpu.memory_space<vmem>>, %arg5: memref<1x1xf32, #tpu.memory_space<smem>>, %arg6: memref<1x128xf32, #tpu.memory_space<vmem>>) attributes {dimension_semantics = [#tpu.dimension_semantics<parallel>], iteration_bounds = array<i64: 1>, scalar_prefetch = 0 : i64, scratch_operands = 0 : i64, tpu.core_type = #tpu.core_type<tc>, window_params = [{transform_indices = @transform_0, window_bounds = array<i64: 128, 32>}, {pipeline_mode = #tpu.pipeline_mode<synchronous>, transform_indices = @transform_1, window_bounds = array<i64: 32, 32>}, {pipeline_mode = #tpu.pipeline_mode<synchronous>, transform_indices = @transform_2, window_bounds = array<i64: 1, 32>}, {pipeline_mode = #tpu.pipeline_mode<synchronous>, transform_indices = @transform_3, window_bounds = array<i64: 1, 32>}, {transform_indices = @transform_4, window_bounds = array<i64: 1, 1>}, {transform_indices = @transform_5, window_bounds = array<i64: 1, 128>}]} {
    %c0 = arith.constant 0 : index
    %c0_0 = arith.constant 0 : index
    %0 = vector.load %arg1[%c0, %c0_0] : memref<128x32xf32, #tpu.memory_space<vmem>>, vector<128x32xf32>
    %1 = arith.truncf %0 : vector<128x32xf32> to vector<128x32xbf16>
    %c0_1 = arith.constant 0 : index
    %c0_2 = arith.constant 0 : index
    %2 = vector.load %arg2[%c0_1, %c0_2] : memref<32x32xbf16, #tpu.memory_space<vmem>>, vector<32x32xbf16>
    %cst = arith.constant dense<0.000000e+00> : vector<128x32xf32>
    %3 = tpu.matmul %1, %2, %cst {dimension_numbers = #tpu.dot_dimension_numbers<[1], [0], [0], [1], [0, 0, 1, 1], [], []>} : vector<128x32xbf16>, vector<32x32xbf16>, vector<128x32xf32> -> vector<128x32xf32>
    %c0_3 = arith.constant 0 : index
    %c0_4 = arith.constant 0 : index
    %4 = vector.load %arg3[%c0_3, %c0_4] : memref<1x32xf32, #tpu.memory_space<vmem>>, vector<1x32xf32>
    %5 = vector.broadcast %4 : vector<1x32xf32> to vector<128x32xf32>
    %6 = arith.addf %3, %5 : vector<128x32xf32>
    %cst_5 = arith.constant 0.000000e+00 : f32
    %7 = vector.broadcast %cst_5 : f32 to vector<128x32xf32>
    %8 = arith.maximumf %6, %7 : vector<128x32xf32>
    %c0_6 = arith.constant 0 : index
    %c0_7 = arith.constant 0 : index
    %9 = vector.load %arg4[%c0_6, %c0_7] : memref<1x32xf32, #tpu.memory_space<vmem>>, vector<1x32xf32>
    %10 = vector.broadcast %9 : vector<1x32xf32> to vector<128x32xf32>
    %11 = arith.mulf %8, %10 : vector<128x32xf32>
    %cst_8 = arith.constant dense<0.000000e+00> : vector<128xf32>
    %12 = vector.multi_reduction <add>, %11, %cst_8 [1] : vector<128x32xf32> to vector<128xf32>
    %c0_9 = arith.constant 0 : index
    %c0_10 = arith.constant 0 : index
    %13 = memref.load %arg5[%c0_9, %c0_10] : memref<1x1xf32, #tpu.memory_space<smem>>
    %14 = vector.broadcast %13 : f32 to vector<128xf32>
    %15 = arith.addf %12, %14 : vector<128xf32>
    %16 = arith.negf %15 : vector<128xf32>
    %17 = math.exp %16 : vector<128xf32>
    %cst_11 = arith.constant 1.000000e+00 : f32
    %18 = vector.broadcast %cst_11 : f32 to vector<128xf32>
    %19 = arith.addf %18, %17 : vector<128xf32>
    %20 = arith.divf %18, %19 : vector<128xf32>
    %21 = vector.shape_cast %20 : vector<128xf32> to vector<1x128xf32>
    %c0_12 = arith.constant 0 : index
    %c0_13 = arith.constant 0 : index
    %22 = vector.load %arg6[%c0_12, %c0_13] : memref<1x128xf32, #tpu.memory_space<vmem>>, vector<1x128xf32>
    tpu.vector_store %arg6[%c0_12, %c0_13], %21 {strides = array<i32>} : memref<1x128xf32, #tpu.memory_space<vmem>>, vector<1x128xf32>,
    return
  }
  func.func @transform_0(%arg0: i32) -> (i32, i32) {
    %c0_i32 = arith.constant 0 : i32
    %c0_i32_0 = arith.constant 0 : i32
    return %arg0, %c0_i32 : i32, i32
  }
  func.func @transform_1(%arg0: i32) -> (i32, i32) {
    %c0_i32 = arith.constant 0 : i32
    %c0_i32_0 = arith.constant 0 : i32
    %c0_i32_1 = arith.constant 0 : i32
    return %c0_i32, %c0_i32_0 : i32, i32
  }
  func.func @transform_2(%arg0: i32) -> (i32, i32) {
    %c0_i32 = arith.constant 0 : i32
    %c0_i32_0 = arith.constant 0 : i32
    %c0_i32_1 = arith.constant 0 : i32
    return %c0_i32, %c0_i32_0 : i32, i32
  }
  func.func @transform_3(%arg0: i32) -> (i32, i32) {
    %c0_i32 = arith.constant 0 : i32
    %c0_i32_0 = arith.constant 0 : i32
    %c0_i32_1 = arith.constant 0 : i32
    return %c0_i32, %c0_i32_0 : i32, i32
  }
  func.func @transform_4(%arg0: i32) -> (i32, i32) {
    %c0_i32 = arith.constant 0 : i32
    %c0_i32_0 = arith.constant 0 : i32
    %c0_i32_1 = arith.constant 0 : i32
    return %c0_i32, %c0_i32_0 : i32, i32
  }
  func.func @transform_5(%arg0: i32) -> (i32, i32) {
    %c0_i32 = arith.constant 0 : i32
    %c0_i32_0 = arith.constant 0 : i32
    return %c0_i32, %arg0 : i32, i32
  }
}

</mosaic_0001>

<bundles_post_ra>
// kernel: tpu_custom_call.1
= control target key start
LH: loop header
LB: loop body
LE: loop exit
PB: predicated region body
PF: predicated region fallthrough
CT: control target
= control target key end

     0   :  { %vm70_vm0 = vcmask 261120   ;;  %s898_s0 = inlined_call_operand.vmem [shape: f32[128,32], index: 0, kind: input, shape index: {}]   ;;  %s899_s1 = inlined_call_operand.vmem [shape: bf16[32,32], index: 1, kind: input, shape index: {}]   ;;  %s900_s2 = inlined_call_operand.vmem [shape: f32[1,32], index: 2, kind: input, shape index: {}]   ;;  %s901_s3 = inlined_call_operand.vmem [shape: f32[1,32], index: 3, kind: input, shape index: {}]   ;;  %s902_s4 = inlined_call_operand.<no memory space> [shape: f32[1,1], index: 4, kind: input, shape index: {}]   ;;  %s903_s5 = inlined_call_operand.hbm [shape: f32[1,128], index: 5, kind: output, shape index: {}]  }
   0x1   :  { %v599_v0 = vld [vmem:[%s899_s1 + $0x8] sm:$0xff]   ;;  %v600_v1 = vld [vmem:[%s899_s1] sm:$0xff]   ;;  %v25_v7 = vld [vmem:[%s898_s0 + $0x10] sm:$0xff] }
   0x2   :  { %574 = vmatprep.subr.bf16.mxu0 %v599_v0  ;;  %594 = vmatprep.subr.bf16.mxu1 %v599_v0  ;;  %v23_v2 = vld [vmem:[%s898_s0] sm:$0xff]  ;;  %v24_v3 = vld [vmem:[%s898_s0 + $0x8] sm:$0xff]  ;;  %v26_v8 = vld [vmem:[%s898_s0 + $0x18] sm:$0xff] }
   0x3   :  { %v31_v4 = vld [vmem:[%s898_s0 + $0x40] sm:$0xff]  ;;  %575 = vmatpush3.bf16.msra.mxu0 %v599_v0  ;;  %596 = vmatpush3.bf16.msra.mxu1 %v599_v0  ;;  %v39_v5 = vpack.c.bf16 %v24_v3, %v23_v2  ;;  %v32_v6 = vld [vmem:[%s898_s0 + $0x48] sm:$0xff]  ;;  %v33_v10 = vld [vmem:[%s898_s0 + $0x50] sm:$0xff]  ;;  %v40_v14 = vpack.c.bf16 %v26_v8, %v25_v7 }
   0x4   :  { %576 = vmatprep.subr.bf16.mxu0 %v600_v1  ;;  %595 = vmatprep.subr.bf16.mxu1 %v600_v1  ;;  %v43_v9 = vpack.c.bf16 %v32_v6, %v31_v4  ;;  %v34_v11 = vld [vmem:[%s898_s0 + $0x58] sm:$0xff]  ;;  %v27_v12 = vld [vmem:[%s898_s0 + $0x20] sm:$0xff]  ;;  %v28_v13 = vld [vmem:[%s898_s0 + $0x28] sm:$0xff] }
   0x5   :  { %578 = vmatprep.mubr.msk.bf16.mxu0 %vm70_vm0, %v39_v5  ;;  %v44_v15 = vpack.c.bf16 %v34_v11, %v33_v10  ;;  %v35_v16 = vld [vmem:[%s898_s0 + $0x60] sm:$0xff]  ;;  %v36_v17 = vld [vmem:[%s898_s0 + $0x68] sm:$0xff]  ;;  %v41_v18 = vpack.c.bf16 %v28_v13, %v27_v12 }
   0x6   :  { %586 = vmatprep.mubr.msk.bf16.mxu1 %vm70_vm0, %v43_v9  ;;  %v45_v19 = vpack.c.bf16 %v36_v17, %v35_v16 }
   0x7   :  { %577 = vmatpush3.bf16.msra.mxu0 %v600_v1  ;;  %597 = vmatpush3.bf16.msra.mxu1 %v600_v1 }
   0x8   :  { %11 = vsyncpa [#allocation4], 0  ;;  %v29_v20 = vld [vmem:[%s898_s0 + $0x30] sm:$0xff]  ;;  %v30_v21 = vld [vmem:[%s898_s0 + $0x38] sm:$0xff]  ;;  %vm420_vm1 = vcmask 130112   ;;  %vm427_vm2 = vcmask 195712  }
   0x9   :  { %v37_v22 = vld [vmem:[%s898_s0 + $0x70] sm:$0xff]  ;;  %v38_v23 = vld [vmem:[%s898_s0 + $0x78] sm:$0xff]  ;;  %v42_v24 = vpack.c.bf16 %v30_v21, %v29_v20  ;;  %v783_v26 = vld [vmem:[%s900_s2] ss:$0 sm:$0xff]  ;;  %vm434_vm3 = vcmask 261312   ;;  %vm441_vm4 = vcmask 326912  }
   0xa   :  { %579 = vmatmul.mubr.msk.bf16.vlgmr.msra.gmra.mxu0 %vm70_vm0, %v40_v14  ;;  %587 = vmatmul.mubr.msk.bf16.vlgmr.msra.gmra.mxu1 %vm70_vm0, %v44_v15  ;;  %v46_v25 = vpack.c.bf16 %v38_v23, %v37_v22  ;;  %v791_v35 = vld [vmem:[%s901_s3] ss:$0 sm:$0xff]  ;;  %vm448_vm5 = vcmask 392512   ;;  %vm455_vm6 = vcmask 458112   ;;  %vm462_vm7 = vcmask 523712  }
   0xb   :  { %582 = vmatprep.mubr.msk.bf16.mxu0 %vm70_vm0, %v41_v18  ;;  %590 = vmatprep.mubr.msk.bf16.mxu1 %vm70_vm0, %v45_v19  ;;  %vm469_vm8 = vcmask 589312   ;;  %vm476_vm9 = vcmask 654912   ;;  %vm483_vm10 = vcmask 720512   ;;  %vm490_vm11 = vcmask 786112  }
   0xc   :  { %vm497_vm12 = vcmask 851712   ;;  %vm504_vm13 = vcmask 917312   ;;  %vm511_vm14 = vcmask 982912   ;;  %vm518_vm15 = vcmask 1048512  }
  0x12   :  { %583 = vmatmul.mubr.msk.bf16.gmra.mxu0 %vm70_vm0, %v42_v24  ;;  %591 = vmatmul.mubr.msk.bf16.gmra.mxu1 %vm70_vm0, %v46_v25 }
  0xca   :  { %v580_v27 = vpop.f32.mrf.mxu0  ;;  %v588_v28 = vpop.f32.mrf.mxu1 }
  0xcb   :  { %v138_v29 = vadd.f32 %v580_v27, %v783_v26  ;;  %v170_v12 = vadd.f32 %v588_v28, %v783_v26 }
  0xcc   :  { %v129_v30 = vpop.f32.mrf.mxu0  ;;  %v161_v31 = vpop.f32.mrf.mxu1 }
  0xcd   :  { %v194_v32 = vmax.f32 %v138_v29, 0.0  ;;  %v130_v33 = vadd.f32 %v783_v26, %v129_v30  ;;  %v162_v34 = vadd.f32 %v783_v26, %v161_v31  ;;  %v202_v20 = vmax.f32 %v170_v12, 0.0 }
  0xce   :  { %v581_v36 = vpop.f32.mrf.mxu0  ;;  %v589_v37 = vpop.f32.mrf.mxu1 }
  0xcf   :  { %v192_v38 = vmax.f32 %v130_v33, 0.0  ;;  %v141_v39 = vadd.f32 %v581_v36, %v783_v26  ;;  %v200_v40 = vmax.f32 %v162_v34, 0.0  ;;  %v217_v43 = vmul.f32 %v791_v35, %v194_v32 }
  0xd0   :  { %v132_v41 = vpop.f32.mrf.mxu0  ;;  %v164_v42 = vpop.f32.mrf.mxu1  ;;  %v173_v7 = vadd.f32 %v589_v37, %v783_v26  ;;  %v225_v32 = vmul.f32 %v791_v35, %v202_v20 }
  0xd1   :  { %v195_v44 = vmax.f32 %v141_v39, 0.0  ;;  %v133_v45 = vadd.f32 %v783_v26, %v132_v41  ;;  %v165_v46 = vadd.f32 %v783_v26, %v164_v42  ;;  %v237_v47 = vsel %vm70_vm0, %v217_v43, 0.0 }
  0xd2   :  { %v584_v48 = vpop.f32.mrf.mxu0  ;;  %v215_v49 = vmul.f32 %v791_v35, %v192_v38  ;;  %v592_v50 = vpop.f32.mrf.mxu1  ;;  %238 = vadd.xlane.f32.xlu1 %v237_v47  ;;  %v223_v57 = vmul.f32 %v791_v35, %v200_v40  ;;  %v203_v17 = vmax.f32 %v173_v7, 0.0  ;;  %v261_v38 = vsel %vm70_vm0, %v225_v32, 0.0 }
  0xd3   :  { %v201_v51 = vmax.f32 %v165_v46, 0.0  ;;  %v218_v52 = vmul.f32 %v791_v35, %v195_v44  ;;  %v193_v53 = vmax.f32 %v133_v45, 0.0  ;;  %v154_v54 = vadd.f32 %v584_v48, %v783_v26 }
  0xd4   :  { %v145_v55 = vpop.f32.mrf.mxu0  ;;  %v231_v56 = vsel %vm70_vm0, %v215_v49, 0.0  ;;  %v177_v58 = vpop.f32.mrf.mxu1  ;;  %v255_v3 = vsel %vm70_vm0, %v223_v57, 0.0  ;;  %v226_v28 = vmul.f32 %v791_v35, %v203_v17  ;;  %v186_v29 = vadd.f32 %v592_v50, %v783_v26 }
  0xd5   :  { %232 = vadd.xlane.f32.xlu0 %v231_v56  ;;  %v240_v59 = vsel %vm70_vm0, %v218_v52, 0.0  ;;  %v224_v61 = vmul.f32 %v791_v35, %v201_v51  ;;  %v198_v0 = vmax.f32 %v154_v54, 0.0  ;;  %v146_v1 = vadd.f32 %v783_v26, %v145_v55 }
  0xd6   :  { %v585_v60 = vpop.f32.mrf.mxu0  ;;  %241 = vadd.xlane.f32.xlu1 %v240_v59  ;;  %v593_v63 = vpop.f32.mrf.mxu1  ;;  %v216_v4 = vmul.f32 %v791_v35, %v193_v53  ;;  %v178_v21 = vadd.f32 %v783_v26, %v177_v58  ;;  %v264_v34 = vsel %vm70_vm0, %v226_v28, 0.0  ;;  %v206_v37 = vmax.f32 %v186_v29, 0.0 }
  0xd7   :  { %v157_v62 = vadd.f32 %v585_v60, %v783_v26  ;;  %v258_v8 = vsel %vm70_vm0, %v224_v61, 0.0  ;;  %v196_v13 = vmax.f32 %v146_v1, 0.0  ;;  %v221_v15 = vmul.f32 %v791_v35, %v198_v0 }
  0xd8   :  { %v148_v2 = vpop.f32.mrf.mxu0  ;;  %v180_v11 = vpop.f32.mrf.mxu1  ;;  %v234_v14 = vsel %vm70_vm0, %v216_v4, 0.0  ;;  %v189_v24 = vadd.f32 %v593_v63, %v783_v26  ;;  %v204_v30 = vmax.f32 %v178_v21, 0.0  ;;  %v229_v42 = vmul.f32 %v791_v35, %v206_v37 }
  0xd9   :  { %v199_v5 = vmax.f32 %v157_v62, 0.0  ;;  %v149_v6 = vadd.f32 %v783_v26, %v148_v2  ;;  %256 = vadd.xlane.f32.xlu0 %v255_v3  ;;  %v181_v18 = vadd.f32 %v783_v26, %v180_v11  ;;  %v249_v22 = vsel %vm70_vm0, %v221_v15, 0.0 }
  0xda   :  { %259 = vadd.xlane.f32.xlu1 %v258_v8  ;;  %v219_v23 = vmul.f32 %v791_v35, %v196_v13  ;;  %v207_v33 = vmax.f32 %v189_v24, 0.0  ;;  %v227_v39 = vmul.f32 %v791_v35, %v204_v30  ;;  %v273_v44 = vsel %vm70_vm0, %v229_v42, 0.0 }
  0xdb   :  { %v197_v9 = vmax.f32 %v149_v6, 0.0  ;;  %v222_v10 = vmul.f32 %v791_v35, %v199_v5  ;;  %v205_v25 = vmax.f32 %v181_v18, 0.0  ;;  %v841_v46 = vstv %s902_s4  ;;  %s687_s4 = smov [#allocation3]  }
  0xdc   :  { %v243_v31 = vsel %vm70_vm0, %v219_v23, 0.0  ;;  %v230_v40 = vmul.f32 %v791_v35, %v207_v33  ;;  %v267_v41 = vsel %vm70_vm0, %v227_v39, 0.0  ;;  %s528_s30 = sshll.u32 %s687_s4, 4  ;;  %s529_s30 = int_to_ptr.vmem [resolvable:$true] %s528_s30 }
  0xdd   :  { %235 = vadd.xlane.f32.xlu0 %v234_v14  ;;  %v252_v16 = vsel %vm70_vm0, %v222_v10, 0.0  ;;  %v220_v19 = vmul.f32 %v791_v35, %v197_v9  ;;  %v228_v36 = vmul.f32 %v791_v35, %v205_v25  ;;  %s665_s6 = scalar_lea.vmem %s529_s30, 16  ;;  %s669_s7 = scalar_lea.vmem %s529_s30, 32 }
  0xde   :  { %253 = vadd.xlane.f32.xlu1 %v252_v16  ;;  %v276_v43 = vsel %vm70_vm0, %v230_v40, 0.0  ;;  %p666_p0 = scmp.ne.s32.totalorder %s529_s30, %s665_s6  ;;  %p670_p1 = scmp.lt.s32.totalorder %s529_s30, %s529_s30 }
  0xdf   :  { %v246_v27 = vsel %vm70_vm0, %v220_v19, 0.0  ;;  %v270_v26 = vsel %vm70_vm0, %v228_v36, 0.0  ;;  %p671_p2 = scmp.lt.s32.totalorder %s669_s7, %s665_s6 }
  0xe1   :  { %250 = vadd.xlane.f32.xlu0 %v249_v22  ;;  %p672_p3 = por %p671_p2, %p670_p1 }
  0xe2   :  { %247 = vadd.xlane.f32.xlu1 %v246_v27 }
  0xe3   :  { %p673_p4 = pnand %p672_p3, %p666_p0 }
  0xe5   :  { %244 = vadd.xlane.f32.xlu0 %v243_v31 }
  0xe6   :  { %265 = vadd.xlane.f32.xlu1 %v264_v34  ;;  %v409_v34 = vlaneseq }
  0xe9   :  { %262 = vadd.xlane.f32.xlu0 %v261_v38 }
  0xea   :  { %271 = vadd.xlane.f32.xlu1 %v270_v26 }
  0xed   :  { %268 = vadd.xlane.f32.xlu0 %v267_v41 }
  0xee   :  { %277 = vadd.xlane.f32.xlu1 %v276_v43 }
  0xf1   :  { %274 = vadd.xlane.f32.xlu0 %v273_v44  ;;  %v859_v44 = vand.u32 127, %v409_v34 }
 0x15b   :  { %v239_v45 = vpop.xlane.xlu1 %238 }
 0x15c   :  { %v283_v49 = vadd.f32 %v841_v46, %v239_v45 }
 0x15e   :  { %v233_v47 = vpop.xlane.xlu0 %232  ;;  %v550_v52 = vmul.f32 -1.442695, %v283_v49  ;;  %v415_v49 = vadd.s32 4294967288, %v859_v44 }
 0x15f   :  { %v281_v48 = vadd.f32 %v841_v46, %v233_v47  ;;  %v242_v50 = vpop.xlane.xlu1 %241 }
 0x160   :  { %v284_v54 = vadd.f32 %v841_v46, %v242_v50 }
 0x161   :  { %v548_v35 = vmul.f32 -1.442695, %v281_v48 }
 0x162   :  { %v257_v51 = vpop.xlane.xlu0 %256  ;;  %v551_v59 = vmul.f32 -1.442695, %v284_v54 }
 0x163   :  { %v260_v53 = vpop.xlane.xlu1 %259  ;;  %601 = vpow2.f32 %v548_v35  ;;  %v289_v57 = vadd.f32 %v841_v46, %v257_v51 }
 0x164   :  { %603 = vpow2.f32 %v550_v52  ;;  %v290_v63 = vadd.f32 %v841_v46, %v260_v53  ;;  %v862_v52 = vshrl.u32 %v409_v34, 7 }
 0x165   :  { %v556_v1 = vmul.f32 -1.442695, %v289_v57 }
 0x166   :  { %v236_v55 = vpop.xlane.xlu0 %235  ;;  %v557_v7 = vmul.f32 -1.442695, %v290_v63 }
 0x167   :  { %v282_v56 = vadd.f32 %v841_v46, %v236_v55  ;;  %v254_v58 = vpop.xlane.xlu1 %253  ;;  %v418_v55 = vsub.s32 %v415_v49, %v862_v52 }
 0x168   :  { %v288_v61 = vadd.f32 %v841_v46, %v254_v58  ;;  %v422_v58 = vadd.s32 4294967280, %v859_v44 }
 0x169   :  { %v549_v60 = vmul.f32 -1.442695, %v282_v56 }
 0x16a   :  { %v251_v62 = vpop.xlane.xlu0 %250  ;;  %v555_v3 = vmul.f32 -1.442695, %v288_v61  ;;  %v413_v61 = vsub.s32 %v859_v44, %v862_v52 }
 0x16b   :  { %605 = vpow2.f32 %v549_v60  ;;  %v287_v0 = vadd.f32 %v841_v46, %v251_v62  ;;  %v248_v2 = vpop.xlane.xlu1 %247  ;;  %v429_v62 = vadd.s32 4294967272, %v859_v44 }
 0x16c   :  { %607 = vpow2.f32 %v551_v59  ;;  %v286_v5 = vadd.f32 %v841_v46, %v248_v2 }
 0x16d   :  { %v554_v4 = vmul.f32 -1.442695, %v287_v0 }
 0x16e   :  { %v245_v6 = vpop.xlane.xlu0 %244  ;;  %v553_v8 = vmul.f32 -1.442695, %v286_v5  ;;  %v436_v5 = vadd.s32 4294967264, %v859_v44 }
 0x16f   :  { %609 = vpow2.f32 %v554_v4  ;;  %v285_v9 = vadd.f32 %v841_v46, %v245_v6  ;;  %v266_v10 = vpop.xlane.xlu1 %265  ;;  %v425_v4 = vsub.s32 %v422_v58, %v862_v52  ;;  %v513_v58 = vadd.s32 4294967176, %v859_v44 }
 0x170   :  { %611 = vpow2.f32 %v556_v1  ;;  %v292_v12 = vadd.f32 %v841_v46, %v266_v10  ;;  %v602_v13 = vpop.eup %601  ;;  %v464_v10 = vadd.s32 4294967232, %v859_v44 }
 0x171   :  { %613 = vpow2.f32 %v555_v3  ;;  %v552_v11 = vmul.f32 -1.442695, %v285_v9  ;;  %v604_v18 = vpop.eup %603  ;;  %v345_v19 = vadd.f32 1.0, %v602_v13  ;;  %v432_v9 = vsub.s32 %v429_v62, %v862_v52 }
 0x172   :  { %615 = vpow2.f32 %v553_v8  ;;  %v263_v14 = vpop.xlane.xlu0 %262  ;;  %v559_v15 = vmul.f32 -1.442695, %v292_v12  ;;  %v347_v27 = vadd.f32 1.0, %v604_v18  ;;  %v471_v12 = vadd.s32 4294967224, %v859_v44 }
 0x173   :  { %617 = vpow2.f32 %v557_v7  ;;  %v291_v16 = vadd.f32 %v841_v46, %v263_v14  ;;  %v272_v17 = vpop.xlane.xlu1 %271  ;;  %v450_v13 = vadd.s32 4294967248, %v859_v44 }
 0x174   :  { %619 = vpow2.f32 %v552_v11  ;;  %v294_v21 = vadd.f32 %v841_v46, %v272_v17  ;;  %v443_v11 = vadd.s32 4294967256, %v859_v44  ;;  %v457_v17 = vadd.s32 4294967240, %v859_v44 }
 0x175   :  { %v558_v20 = vmul.f32 -1.442695, %v291_v16  ;;  %621 = vpow2.f32 %v559_v15 }
 0x176   :  { %v269_v22 = vpop.xlane.xlu0 %268  ;;  %v561_v23 = vmul.f32 -1.442695, %v294_v21  ;;  %v460_v34 = vsub.s32 %v457_v17, %v862_v52 }
 0x177   :  { %v293_v24 = vadd.f32 %v841_v46, %v269_v22  ;;  %623 = vpow2.f32 %v558_v20  ;;  %v278_v28 = vpop.xlane.xlu1 %277  ;;  %v439_v20 = vsub.s32 %v436_v5, %v862_v52  ;;  %v485_v22 = vadd.s32 4294967208, %v859_v44 }
 0x178   :  { %v606_v25 = vpop.eup %605  ;;  %625 = vrcp.f32 %v345_v19  ;;  %v296_v31 = vadd.f32 %v841_v46, %v278_v28 }
 0x179   :  { %v346_v29 = vadd.f32 1.0, %v606_v25  ;;  %v560_v30 = vmul.f32 -1.442695, %v293_v24  ;;  %v608_v32 = vpop.eup %607  ;;  %627 = vpow2.f32 %v561_v23  ;;  %v467_v24 = vsub.s32 %v464_v10, %v862_v52 }
 0x17a   :  { %v275_v33 = vpop.xlane.xlu0 %274  ;;  %v563_v36 = vmul.f32 -1.442695, %v296_v31  ;;  %v348_v26 = vadd.f32 1.0, %v608_v32  ;;  %v446_v25 = vsub.s32 %v443_v11, %v862_v52 }
 0x17b   :  { %629 = vrcp.f32 %v346_v29  ;;  %v295_v37 = vadd.f32 %v841_v46, %v275_v33  ;;  %v474_v33 = vsub.s32 %v471_v12, %v862_v52 }
 0x17c   :  { %v610_v38 = vpop.eup %609  ;;  %631 = vpow2.f32 %v560_v30  ;;  %v453_v30 = vsub.s32 %v450_v13, %v862_v52 }
 0x17d   :  { %v612_v39 = vpop.eup %611  ;;  %633 = vrcp.f32 %v347_v27  ;;  %v562_v40 = vmul.f32 -1.442695, %v295_v37  ;;  %v351_v42 = vadd.f32 1.0, %v610_v38  ;;  %v478_v27 = vadd.s32 4294967216, %v859_v44 }
 0x17e   :  { %v614_v41 = vpop.eup %613  ;;  %635 = vpow2.f32 %v563_v36  ;;  %v353_v50 = vadd.f32 1.0, %v612_v39  ;;  %v488_v38 = vsub.s32 %v485_v22, %v862_v52  ;;  %v492_v39 = vadd.s32 4294967200, %v859_v44 }
 0x17f   :  { %v616_v43 = vpop.eup %615  ;;  %637 = vpow2.f32 %v562_v40  ;;  %v352_v46 = vadd.f32 1.0, %v614_v41 }
 0x180   :  { %v618_v45 = vpop.eup %617  ;;  %v350_v47 = vadd.f32 1.0, %v616_v43  ;;  %639 = vrcp.f32 %v348_v26 }
 0x181   :  { %v620_v48 = vpop.eup %619  ;;  %641 = vrcp.f32 %v351_v42  ;;  %v354_v53 = vadd.f32 1.0, %v618_v45  ;;  %v481_v42 = vsub.s32 %v478_v27, %v862_v52 }
 0x182   :  { %v349_v35 = vadd.f32 1.0, %v620_v48  ;;  %v622_v51 = vpop.eup %621  ;;  %643 = vrcp.f32 %v350_v47  ;;  %v499_v48 = vadd.s32 4294967192, %v859_v44 }
 0x183   :  { %v356_v56 = vadd.f32 1.0, %v622_v51 }
 0x184   :  { %645 = vrcp.f32 %v349_v35  ;;  %v624_v54 = vpop.eup %623 }
 0x185   :  { %647 = vrcp.f32 %v352_v46  ;;  %v626_v57 = vpop.eup %625  ;;  %v355_v59 = vadd.f32 1.0, %v624_v54  ;;  %v495_v54 = vsub.s32 %v492_v39, %v862_v52 }
 0x186   :  { %649 = vrcp.f32 %v353_v50  ;;  %v628_v60 = vpop.eup %627  ;;  %v414_v8 = vrot.slane %v626_v57, %v413_v61 }
 0x187   :  { %651 = vrcp.f32 %v354_v53  ;;  %v358_v2 = vadd.f32 1.0, %v628_v60 }
 0x188   :  { %v630_v63 = vpop.eup %629  ;;  %653 = vrcp.f32 %v355_v59 }
 0x189   :  { %v632_v0 = vpop.eup %631  ;;  %v419_v1 = vrot.slane %v630_v63, %v418_v55  ;;  %655 = vrcp.f32 %v356_v56  ;;  %v506_v55 = vadd.s32 4294967184, %v859_v44 }
 0x18a   :  { %v634_v3 = vpop.eup %633  ;;  %v357_v6 = vadd.f32 1.0, %v632_v0  ;;  %v502_v0 = vsub.s32 %v499_v48, %v862_v52 }
 0x18b   :  { %v636_v7 = vpop.eup %635  ;;  %v421_v16 = vsel %vm420_vm1, %v419_v1, %v414_v8  ;;  %v426_v19 = vrot.slane %v634_v3, %v425_v4  ;;  %v509_v4 = vsub.s32 %v506_v55, %v862_v52 }
 0x18c   :  { %657 = vrcp.f32 %v357_v6  ;;  %v360_v14 = vadd.f32 1.0, %v636_v7  ;;  %v638_v15 = vpop.eup %637  ;;  %v516_v6 = vsub.s32 %v513_v58, %v862_v52 }
 0x18d   :  { %659 = vrcp.f32 %v358_v2  ;;  %v640_v18 = vpop.eup %639  ;;  %v359_v21 = vadd.f32 1.0, %v638_v15  ;;  %v428_v29 = vsel %vm427_vm2, %v426_v19, %v421_v16 }
 0x18e   :  { %v642_v23 = vpop.eup %641  ;;  %661 = vrcp.f32 %v360_v14  ;;  %v433_v32 = vrot.slane %v640_v18, %v432_v9 }
 0x18f   :  { %v644_v28 = vpop.eup %643  ;;  %663 = vrcp.f32 %v359_v21  ;;  %v454_v45 = vrot.slane %v642_v23, %v453_v30 }
 0x190   :  { %v447_v40 = vrot.slane %v644_v28, %v446_v25  ;;  %v435_v41 = vsel %vm434_vm3, %v433_v32, %v428_v29 }
 0x191   :  { %v646_v31 = vpop.eup %645 }
 0x192   :  { %v648_v36 = vpop.eup %647  ;;  %v440_v37 = vrot.slane %v646_v31, %v439_v20 }
 0x193   :  { %v650_v26 = vpop.eup %649  ;;  %v461_v46 = vrot.slane %v648_v36, %v460_v34 }
 0x194   :  { %v652_v43 = vpop.eup %651  ;;  %v442_v47 = vsel %vm441_vm4, %v440_v37, %v435_v41  ;;  %v468_v51 = vrot.slane %v650_v26, %v467_v24 }
 0x195   :  { %v654_v49 = vpop.eup %653  ;;  %v449_v50 = vsel %vm448_vm5, %v447_v40, %v442_v47  ;;  %v475_v56 = vrot.slane %v652_v43, %v474_v33 }
 0x196   :  { %v656_v35 = vpop.eup %655  ;;  %v456_v53 = vsel %vm455_vm6, %v454_v45, %v449_v50  ;;  %v482_v60 = vrot.slane %v654_v49, %v481_v42 }
 0x197   :  { %v463_v57 = vsel %vm462_vm7, %v461_v46, %v456_v53  ;;  %v489_v63 = vrot.slane %v656_v35, %v488_v38 }
 0x198   :  { %v470_v59 = vsel %vm469_vm8, %v468_v51, %v463_v57 }
 0x199   :  { %v658_v61 = vpop.eup %657  ;;  %v477_v62 = vsel %vm476_vm9, %v475_v56, %v470_v59 }
 0x19a   :  { %v660_v1 = vpop.eup %659  ;;  %v484_v2 = vsel %vm483_vm10, %v482_v60, %v477_v62  ;;  %v496_v3 = vrot.slane %v658_v61, %v495_v54 }
 0x19b   :  { %v491_v5 = vsel %vm490_vm11, %v489_v63, %v484_v2  ;;  %v662_v7 = vpop.eup %661  ;;  %v503_v9 = vrot.slane %v660_v1, %v502_v0 }
 0x19c   :  { %v498_v8 = vsel %vm497_vm12, %v496_v3, %v491_v5  ;;  %v664_v44 = vpop.eup %663  ;;  %v517_v12 = vrot.slane %v662_v7, %v516_v6 }
 0x19d   :  { %v510_v10 = vrot.slane %v664_v44, %v509_v4  ;;  %v505_v11 = vsel %vm504_vm13, %v503_v9, %v498_v8 }
 0x19f   :  { %v512_v13 = vsel %vm511_vm14, %v510_v10, %v505_v11 }
 0x1a0   :  { %v519_v14 = vsel %vm518_vm15, %v517_v12, %v512_v13 }
 0x1a1   :  { %521 = vst [vmem:[#allocation3] sm:$0x1] %v519_v14 }
 0x1a2   :  { %676 = shalt.err (!%p673_p4)
}
 0x1a3   :  { %531 = dma.vmem_to_hbm [thread:$0]  %s529_s30, 16, %s903_s5, [#allocation4]  }
 0x1a4   :  { %685 = dma.done.wait [#allocation4], 16  }
 0x1a5   :  { %686 = vsyncadd [#allocation4], 4294967280 }
 0x1a6   :  { %535 = vsyncpa [#allocation4], 1 }

</bundles_post_ra>
